<compile_context>
chip_gen: v5e
topology: v5e:2x2
jax: 0.10.0
libtpu: 0.0.40
codegen_flags: <defaults>
</compile_context>

<pallas_src>
import jax
import jax.numpy as jnp
from jax import lax
from jax.experimental import pallas as pl
from jax.experimental.pallas import tpu as pltpu
import numpy as np

_INV_SQRT2 = 0.7071067811865476


def _round_up(x, m):
    return ((x + m - 1) // m) * m


def _gelu_exact(h):
    # Exact (erf) GELU in f32 -- matches torch.nn.GELU() default.
    return 0.5 * h * (1.0 + lax.erf(h * jnp.float32(_INV_SQRT2)))


def _ffn_kernel_reduce(x_ref, w1_ref, b1_ref, w2_ref, b2_ref, y_ref, acc_ref):
    """grid = (M/tm, d_ff/tk); axis 1 is the d_ff reduction."""
    k = pl.program_id(1)

    @pl.when(k == 0)
    def _init():
        acc_ref[...] = jnp.zeros_like(acc_ref)

    # Linear1 slice (d_ff tile) + exact GELU, epilogue in f32.
    h = jnp.dot(x_ref[...], w1_ref[...],
                preferred_element_type=jnp.float32) + b1_ref[...]
    h = _gelu_exact(h)

    # Linear2 partial product for this d_ff tile (gate already folded into W2).
    acc_ref[...] += jnp.dot(h.astype(w2_ref.dtype), w2_ref[...],
                            preferred_element_type=jnp.float32)

    @pl.when(k == pl.num_programs(1) - 1)
    def _finalize():
        y_ref[...] = (acc_ref[...] + b2_ref[...]).astype(y_ref.dtype)


def _ffn_kernel_single(x_ref, w1_ref, b1_ref, w2_ref, b2_ref, y_ref):
    """Whole d_ff fits in one tile -> no accumulator scratch needed."""
    h = jnp.dot(x_ref[...], w1_ref[...],
                preferred_element_type=jnp.float32) + b1_ref[...]
    h = _gelu_exact(h)
    y = jnp.dot(h.astype(w2_ref.dtype), w2_ref[...],
                preferred_element_type=jnp.float32) + b2_ref[...]
    y_ref[...] = y.astype(y_ref.dtype)


def unified_ffn(x, w1, b1, w2, b2, thresholds, *, tm=256, tk=512,
                compute_dtype=jnp.bfloat16):
    """x: (B, S, d_model). Returns (y, indicators, probs)."""
    B, S, d_model = x.shape
    d_ff = w1.shape[1]
    M = B * S

    # --- gating computed once, outside the grid (eval-mode hard threshold) ---
    probs = jax.nn.sigmoid(thresholds.astype(jnp.float32))      # [d_ff]
    ind = (probs > 0.5).astype(jnp.float32)                     # [d_ff]
    # Fold diag(ind) into W2 rows: exact, since ind in {0, 1}.
    w2_gated = w2.astype(jnp.float32) * ind[:, None]

    x2d = x.reshape(M, d_model)
    b1_v = b1.astype(jnp.float32)
    b2_v = b2.astype(jnp.float32)
    w1_v = w1

    # --- lane-dense d_model padding (no-op when d_model % 128 == 0) ---------
    Np = _round_up(d_model, 128)
    if Np != d_model:
        pad_n = Np - d_model
        x2d = jnp.pad(x2d, ((0, 0), (0, pad_n)))            # extra K cols -> 0
        w1_v = jnp.pad(w1_v, ((0, pad_n), (0, 0)))           # extra K rows -> 0
        w2_gated = jnp.pad(w2_gated, ((0, 0), (0, pad_n)))   # extra N cols -> 0
        b2_v = jnp.pad(b2_v, (0, pad_n))

    # --- row (M) tiling / padding -------------------------------------------
    tm_eff = min(tm, _round_up(M, 8))
    Mp = _round_up(M, tm_eff)
    if Mp != M:
        x2d = jnp.pad(x2d, ((0, Mp - M), (0, 0)))

    # --- d_ff tiling / padding (zero d_ff channels are exact: gelu(0)*0 = 0) -
    tk_eff = min(tk, d_ff)
    Fp = _round_up(d_ff, tk_eff)
    if Fp != d_ff:
        w1_v = jnp.pad(w1_v, ((0, 0), (0, Fp - d_ff)))
        b1_v = jnp.pad(b1_v, (0, Fp - d_ff))
        w2_gated = jnp.pad(w2_gated, ((0, Fp - d_ff), (0, 0)))

    # --- dtypes: bf16 matmul operands, f32 biases / accumulate / output ------
    x_in = x2d.astype(compute_dtype)
    w1_in = w1_v.astype(compute_dtype)
    w2_in = w2_gated.astype(compute_dtype)
    b1_2d = b1_v.reshape(1, Fp)
    b2_2d = b2_v.reshape(1, Np)

    grid = (Mp // tm_eff, Fp // tk_eff)
    single_step = grid[1] == 1

    itemsize = jnp.dtype(compute_dtype).itemsize
    cost = pl.CostEstimate(
        flops=4 * M * d_model * d_ff,
        transcendentals=M * d_ff,
        bytes_accessed=(M * d_model * itemsize            # x
                        + d_model * d_ff * itemsize       # W1
                        + d_ff * d_model * itemsize       # W2
                        + (d_ff + d_model) * 4            # biases
                        + M * d_model * 4))               # y

    in_specs = [
        pl.BlockSpec((tm_eff, Np), lambda i, k: (i, 0)),       # x rows (resident over k)
        pl.BlockSpec((Np, tk_eff), lambda i, k: (0, k)),       # W1 tile
        pl.BlockSpec((1, tk_eff), lambda i, k: (0, k)),        # b1 tile
        pl.BlockSpec((tk_eff, Np), lambda i, k: (k, 0)),       # W2 tile (gated)
        pl.BlockSpec((1, Np), lambda i, k: (0, 0)),            # b2
    ]
    out_spec = pl.BlockSpec((tm_eff, Np), lambda i, k: (i, 0))

    kernel = _ffn_kernel_single if single_step else _ffn_kernel_reduce
    scratch = [] if single_step else [pltpu.VMEM((tm_eff, Np), jnp.float32)]

    y2d = pl.pallas_call(
        kernel,
        out_shape=jax.ShapeDtypeStruct((Mp, Np), x.dtype),
        grid_spec=pltpu.PrefetchScalarGridSpec(
            num_scalar_prefetch=0,
            grid=grid,
            in_specs=in_specs,
            out_specs=out_spec,
            scratch_shapes=scratch,
        ),
        compiler_params=pltpu.CompilerParams(
            dimension_semantics=("parallel", "arbitrary"),
            vmem_limit_bytes=48 * 1024 * 1024),
        cost_estimate=cost,
    )(x_in, w1_in, b1_2d, w2_in, b2_2d)

    y = y2d[:M, :d_model].reshape(B, S, d_model)
    return y, ind, probs


def _reference(x, w1, b1, w2, b2, thresholds):
    probs = jax.nn.sigmoid(thresholds)
    ind = (probs > 0.5).astype(jnp.float32)
    h = x @ w1 + b1
    h = 0.5 * h * (1.0 + lax.erf(h / jnp.sqrt(2.0)))
    h = h * ind
    y = h @ w2 + b2
    return y, ind, probs


if __name__ == "__main__":
    B, S, d_model, d_ff = 2, 8, 32, 256
    key = jax.random.PRNGKey(0)
    kx, k1, kb1, k2, kb2, kt = jax.random.split(key, 6)

    x = jax.random.normal(kx, (B, S, d_model), dtype=jnp.float32)
    # Linear weights stored transposed for the kernel: W1 [d_model, d_ff], W2 [d_ff, d_model].
    w1 = jax.random.normal(k1, (d_model, d_ff), dtype=jnp.float32) * 0.1
    b1 = jax.random.normal(kb1, (d_ff,), dtype=jnp.float32) * 0.1
    w2 = jax.random.normal(k2, (d_ff, d_model), dtype=jnp.float32) * 0.1
    b2 = jax.random.normal(kb2, (d_model,), dtype=jnp.float32) * 0.1
    # ffn_thresholds: random values so the gating mask is non-trivial (deterministic).
    thresholds = jax.random.normal(kt, (d_ff,), dtype=jnp.float32)

    y_ref, ind_ref, probs_ref = _reference(x.reshape(-1, d_model), w1, b1, w2,
                                           b2, thresholds)
    y_ref = y_ref.reshape(B, S, d_model)

    # f32 compute path, tk=128 -> 2-step d_ff reduction (accumulator kernel).
    y32, ind32, probs32 = unified_ffn(x, w1, b1, w2, b2, thresholds,
                                      tm=256, tk=128, compute_dtype=jnp.float32)
    jax.block_until_ready(y32)
    assert np.allclose(np.asarray(y32), np.asarray(y_ref), atol=1e-4, rtol=1e-4)
    assert np.allclose(np.asarray(ind32), np.asarray(ind_ref))
    assert np.allclose(np.asarray(probs32), np.asarray(probs_ref), atol=1e-6)

    # f32 compute, single-k-step (scratch-free kernel) path.
    y32b, _, _ = unified_ffn(x, w1, b1, w2, b2, thresholds,
                             tm=256, tk=512, compute_dtype=jnp.float32)
    jax.block_until_ready(y32b)
    assert np.allclose(np.asarray(y32b), np.asarray(y_ref), atol=1e-4, rtol=1e-4)

    # Default bf16 matmul-operand path (looser check: bf16 inputs, f32 accumulate).
    y16, ind16, probs16 = unified_ffn(x, w1, b1, w2, b2, thresholds, tk=128)
    jax.block_until_ready(y16)
    jax.block_until_ready(ind16)
    jax.block_until_ready(probs16)
    assert np.allclose(np.asarray(y16), np.asarray(y_ref), atol=5e-2, rtol=5e-2)
    assert np.allclose(np.asarray(ind16), np.asarray(ind_ref))
    assert np.allclose(np.asarray(probs16), np.asarray(probs_ref), atol=1e-6)

    print("KERNEL_OK")
</pallas_src>

<mosaic_0001>
module attributes {stable_mosaic.version = 11 : i64} {
  func.func @_ffn_kernel_reduce(%arg0: i32, %arg1: i32, %arg2: memref<16x128xf32, #tpu.memory_space<vmem>>, %arg3: memref<128x128xf32, #tpu.memory_space<vmem>>, %arg4: memref<1x128xf32, #tpu.memory_space<vmem>>, %arg5: memref<128x128xf32, #tpu.memory_space<vmem>>, %arg6: memref<1x128xf32, #tpu.memory_space<vmem>>, %arg7: memref<16x128xf32, #tpu.memory_space<vmem>>, %arg8: memref<16x128xf32, #tpu.memory_space<vmem>>) attributes {dimension_semantics = [#tpu.dimension_semantics<parallel>, #tpu.dimension_semantics<arbitrary>], iteration_bounds = array<i64: 1, 2>, scalar_prefetch = 0 : i64, scratch_operands = 1 : i64, tpu.core_type = #tpu.core_type<tc>, window_params = [{transform_indices = @transform_0, window_bounds = array<i64: 16, 128>}, {transform_indices = @transform_1, window_bounds = array<i64: 128, 128>}, {transform_indices = @transform_2, window_bounds = array<i64: 1, 128>}, {transform_indices = @transform_3, window_bounds = array<i64: 128, 128>}, {pipeline_mode = #tpu.pipeline_mode<synchronous>, transform_indices = @transform_4, window_bounds = array<i64: 1, 128>}, {transform_indices = @transform_5, window_bounds = array<i64: 16, 128>}]} {
    %c0_i32 = arith.constant 0 : i32
    %0 = arith.cmpi eq, %arg1, %c0_i32 : i32
    %1 = arith.extui %0 : i1 to i32
    %c0_i32_0 = arith.constant 0 : i32
    %2 = arith.cmpi ne, %1, %c0_i32_0 : i32
    scf.if %2 {
      %cst_17 = arith.constant 0.000000e+00 : f32
      %25 = vector.broadcast %cst_17 : f32 to vector<16x128xf32>
      %c0_18 = arith.constant 0 : index
      %c0_19 = arith.constant 0 : index
      %26 = vector.load %arg8[%c0_18, %c0_19] : memref<16x128xf32, #tpu.memory_space<vmem>>, vector<16x128xf32>
      tpu.vector_store %arg8[%c0_18, %c0_19], %25 {strides = array<i32>} : memref<16x128xf32, #tpu.memory_space<vmem>>, vector<16x128xf32>,
    } else {
    }
    %c0 = arith.constant 0 : index
    %c0_1 = arith.constant 0 : index
    %3 = vector.load %arg2[%c0, %c0_1] : memref<16x128xf32, #tpu.memory_space<vmem>>, vector<16x128xf32>
    %c0_2 = arith.constant 0 : index
    %c0_3 = arith.constant 0 : index
    %4 = vector.load %arg3[%c0_2, %c0_3] : memref<128x128xf32, #tpu.memory_space<vmem>>, vector<128x128xf32>
    %cst = arith.constant dense<0.000000e+00> : vector<16x128xf32>
    %5 = tpu.matmul %3, %4, %cst {dimension_numbers = #tpu.dot_dimension_numbers<[1], [0], [0], [1], [0, 0, 1, 1], [], []>} : vector<16x128xf32>, vector<128x128xf32>, vector<16x128xf32> -> vector<16x128xf32>
    %c0_4 = arith.constant 0 : index
    %c0_5 = arith.constant 0 : index
    %6 = vector.load %arg4[%c0_4, %c0_5] : memref<1x128xf32, #tpu.memory_space<vmem>>, vector<1x128xf32>
    %7 = vector.broadcast %6 : vector<1x128xf32> to vector<16x128xf32>
    %8 = arith.addf %5, %7 : vector<16x128xf32>
    %cst_6 = arith.constant 5.000000e-01 : f32
    %9 = vector.broadcast %cst_6 : f32 to vector<16x128xf32>
    %10 = arith.mulf %9, %8 : vector<16x128xf32>
    %cst_7 = arith.constant 0.707106769 : f32
    %11 = vector.broadcast %cst_7 : f32 to vector<16x128xf32>
    %12 = arith.mulf %8, %11 : vector<16x128xf32>
    %13 = math.erf %12 : vector<16x128xf32>
    %cst_8 = arith.constant 1.000000e+00 : f32
    %14 = vector.broadcast %cst_8 : f32 to vector<16x128xf32>
    %15 = arith.addf %14, %13 : vector<16x128xf32>
    %16 = arith.mulf %10, %15 : vector<16x128xf32>
    %c0_9 = arith.constant 0 : index
    %c0_10 = arith.constant 0 : index
    %17 = vector.load %arg8[%c0_9, %c0_10] : memref<16x128xf32, #tpu.memory_space<vmem>>, vector<16x128xf32>
    %c0_11 = arith.constant 0 : index
    %c0_12 = arith.constant 0 : index
    %18 = vector.load %arg5[%c0_11, %c0_12] : memref<128x128xf32, #tpu.memory_space<vmem>>, vector<128x128xf32>
    %cst_13 = arith.constant dense<0.000000e+00> : vector<16x128xf32>
    %19 = tpu.matmul %16, %18, %cst_13 {dimension_numbers = #tpu.dot_dimension_numbers<[1], [0], [0], [1], [0, 0, 1, 1], [], []>} : vector<16x128xf32>, vector<128x128xf32>, vector<16x128xf32> -> vector<16x128xf32>
    %20 = arith.addf %17, %19 : vector<16x128xf32>
    %c0_14 = arith.constant 0 : index
    %c0_15 = arith.constant 0 : index
    %21 = vector.load %arg8[%c0_14, %c0_15] : memref<16x128xf32, #tpu.memory_space<vmem>>, vector<16x128xf32>
    tpu.vector_store %arg8[%c0_14, %c0_15], %20 {strides = array<i32>} : memref<16x128xf32, #tpu.memory_space<vmem>>, vector<16x128xf32>,
    %c1_i32 = arith.constant 1 : i32
    %22 = arith.cmpi eq, %arg1, %c1_i32 : i32
    %23 = arith.extui %22 : i1 to i32
    %c0_i32_16 = arith.constant 0 : i32
    %24 = arith.cmpi ne, %23, %c0_i32_16 : i32
    scf.if %24 {
      %c0_17 = arith.constant 0 : index
      %c0_18 = arith.constant 0 : index
      %25 = vector.load %arg8[%c0_17, %c0_18] : memref<16x128xf32, #tpu.memory_space<vmem>>, vector<16x128xf32>
      %c0_19 = arith.constant 0 : index
      %c0_20 = arith.constant 0 : index
      %26 = vector.load %arg6[%c0_19, %c0_20] : memref<1x128xf32, #tpu.memory_space<vmem>>, vector<1x128xf32>
      %27 = vector.broadcast %26 : vector<1x128xf32> to vector<16x128xf32>
      %28 = arith.addf %25, %27 : vector<16x128xf32>
      %c0_21 = arith.constant 0 : index
      %c0_22 = arith.constant 0 : index
      %29 = vector.load %arg7[%c0_21, %c0_22] : memref<16x128xf32, #tpu.memory_space<vmem>>, vector<16x128xf32>
      tpu.vector_store %arg7[%c0_21, %c0_22], %28 {strides = array<i32>} : memref<16x128xf32, #tpu.memory_space<vmem>>, vector<16x128xf32>,
    } else {
    }
    return
  }
  func.func @transform_0(%arg0: i32, %arg1: i32) -> (i32, i32) {
    %c0_i32 = arith.constant 0 : i32
    %c0_i32_0 = arith.constant 0 : i32
    return %arg0, %c0_i32 : i32, i32
  }
  func.func @transform_1(%arg0: i32, %arg1: i32) -> (i32, i32) {
    %c0_i32 = arith.constant 0 : i32
    %c0_i32_0 = arith.constant 0 : i32
    return %c0_i32, %arg1 : i32, i32
  }
  func.func @transform_2(%arg0: i32, %arg1: i32) -> (i32, i32) {
    %c0_i32 = arith.constant 0 : i32
    %c0_i32_0 = arith.constant 0 : i32
    return %c0_i32, %arg1 : i32, i32
  }
  func.func @transform_3(%arg0: i32, %arg1: i32) -> (i32, i32) {
    %c0_i32 = arith.constant 0 : i32
    %c0_i32_0 = arith.constant 0 : i32
    return %arg1, %c0_i32 : i32, i32
  }
  func.func @transform_4(%arg0: i32, %arg1: i32) -> (i32, i32) {
    %c0_i32 = arith.constant 0 : i32
    %c0_i32_0 = arith.constant 0 : i32
    %c0_i32_1 = arith.constant 0 : i32
    return %c0_i32, %c0_i32_0 : i32, i32
  }
  func.func @transform_5(%arg0: i32, %arg1: i32) -> (i32, i32) {
    %c0_i32 = arith.constant 0 : i32
    %c0_i32_0 = arith.constant 0 : i32
    return %arg0, %c0_i32 : i32, i32
  }
}

</mosaic_0001>

<bundles_post_ra>
// kernel: tpu_custom_call.1
= control target key start
LH: loop header
LB: loop body
LE: loop exit
PB: predicated region body
PF: predicated region fallthrough
CT: control target
= control target key end

     0   :  { %s1311_s0 = inlined_call_operand.hbm [shape: f32[16,128], index: 0, kind: input, shape index: {}]   ;;  %s1312_s1 = inlined_call_operand.hbm [shape: f32[128,256], index: 1, kind: input, shape index: {}]   ;;  %s1313_s2 = inlined_call_operand.hbm [shape: f32[1,256], index: 2, kind: input, shape index: {}]   ;;  %s1314_s3 = inlined_call_operand.hbm [shape: f32[256,128], index: 3, kind: input, shape index: {}]   ;;  %s1315_s4 = inlined_call_operand.vmem [shape: f32[1,128], index: 4, kind: input, shape index: {}]   ;;  %s1316_s5 = inlined_call_operand.hbm [shape: f32[16,128], index: 5, kind: output, shape index: {}]  }
   0x1   :  { %1318 = sst [smem:[#allocation17_spill]] %s1311_s0 }
   0x2   :  { %1319 = sst [smem:[#allocation18_spill]] %s1312_s1 }
   0x3   :  { %1320 = sst [smem:[#allocation19_spill]] %s1313_s2 }
   0x4   :  { %10 = vsyncpa [#allocation4], 0 }
   0x5   :  { %11 = vsyncpa [#allocation7], 0 }
   0x6   :  { %13 = vsyncpa [#allocation7 + $0x1], 0 }
   0x7   :  { %14 = vsyncpa [#allocation10], 0 }
   0x8   :  { %16 = vsyncpa [#allocation10 + $0x1], 0 }
   0x9   :  { %17 = vsyncpa [#allocation5], 0  ;;  %s1076_s18 = smov 0   ;;  %s1078_s19 = smov 0  }
   0xa   :  { %s1080_s20 = smov 0   ;;  %s1082_s21 = smov 0  }
   0xb   :  { %s1084_s22 = smov 0   ;;  %s1086_s23 = smov 0  }
   0xc LB: > { %s32_s24 = sadd.s32 1, %s1032_s22  ;;  %s68_s25 = sadd.s32 1, %s1024_s20  ;;  %s1036_s23 = sphi %s1086_s23, %s23_s23   ;;  %s1032_s22 = sphi %s1084_s22, %s1334_s22   ;;  %s1028_s21 = sphi %s1082_s21, %s1333_s21   ;;  %s1024_s20 = sphi %s1080_s20, %s1332_s20   ;;  %s1020_s19 = sphi %s1078_s19, %s1331_s19   ;;  %s1016_s18 = sphi %s1076_s18, %s1330_s18  }
   0xd   : > { %p33_p0 = scmp.ge.s32.totalorder %s32_s24, 2  ;;  %p75_p1 = scmp.ne.s32.totalorder %s1024_s20, %s1020_s19 }
   0xe   : > { %p76_p2 = scmp.eq.s32.totalorder %s1036_s23, 0  ;;  %p760_p5 = scmp.lt.s32.totalorder %s1036_s23, 2 }
   0xf   : > { %s1336_s24 = smov (%p33_p0, %s32_s24), 0  ;;  %s224_s28 = sand.u32 1, %s1036_s23  }
  0x10   : > { %1321 = sst [smem:[#allocation16_spill]] %s1336_s24  ;;  %p1113_p3 = por %p76_p2, %p75_p1 }
  0x11   : > { %s65_s27 = ssub.s32 %s1032_s22, %s1336_s24  ;;  %s1122_s29 = sand.u32 1, %s1024_s20  }
  0x12   : > { %p66_p4 = scmp.eq.s32.totalorder %s65_s27, 0  ;;  %s681_s6 = sshll.u32 %s1122_s29, 7 }
  0x13   : > { %s682_s7 = sshll.u32 %s1032_s22, 3  ;;  %s1323_s1 = sld [smem:[#allocation18_spill]] }
  0x14   : > { %s1125_s30 = scalar_select %p66_p4, %s1024_s20, %s68_s25  }
  0x15   : > { %s228_s11 = scalar_lea.vmem [#allocation6], %s681_s6  ;;  %p1136_p6 = pnand %p760_p5, %p1113_p3 }
  0x16   : > { %s235_s12 = sshll.u32 %s228_s11, 4  ;;  %s1140_s15 = scalar_lea.sflag [#allocation7], %s224_s28  ;;  %s236_s12 = int_to_ptr.vmem [resolvable:$true] %s235_s12 }
  0x17   : > { %s1038_s16 = smov 256   ;;  %s1039_s17 = smov 128  }
  0x18   : > { %s1040_s25 = smov 8   ;;  %s1148_s27 = sadd.s32 4294967295, %s1036_s23  }
  0x19   : > { %s232_s10 = scalar_lea.hbm %s1323_s1, %s682_s7  ;;  %p81_p7 = scmp.ne.s32.totalorder %s1020_s19, %s1016_s18 }
  0x1a   : > { %s233_s13 = sshll.u32 %s232_s10, 4  ;;  %p82_p8 = scmp.eq.s32.totalorder %s1148_s27, 0  ;;  %s234_s13 = int_to_ptr.hbm [resolvable:$true] %s233_s13 }
  0x1b   : > { %752 = dma.hbm_to_vmem [thread:$0]  (!%p1136_p6), %s234_s13, 2048, %s236_s12, %s1140_s15, %s1038_s16, %s1039_s17, %s1040_s25  }
  0x1c   : > { %p678_p9 = scmp.ge.s32.totalorder %s1036_s23, 1  ;;  %p191_p10 = scmp.lt.s32.totalorder %s1036_s23, 3 }
  0x1d   : > { %p1157_p11 = por %p82_p8, %p81_p7  ;;  %s1326_s0 = sld [smem:[#allocation17_spill]] }
  0x1e   : > { %p1164_p12 = pnand %p678_p9, %p191_p10  ;;  %s1041_s18 = smov [#allocation3]  }
  0x1f   : > { %s207_s10 = sshll.u32 %s1041_s18, 4  ;;  %s1328_s2 = sld [smem:[#allocation19_spill]]  ;;  %s208_s10 = int_to_ptr.vmem [resolvable:$true] %s207_s10 }
  0x20   : > { %p745_p13 = pneg %p1164_p12  ;;  %s248_s28 = scalar_lea.vmem [#allocation8], %s1122_s29 }
  0x21   : > { %s255_s7 = sshll.u32 %s248_s28, 4  ;;  %s698_s18 = sshll.u32 %s1032_s22, 7  ;;  %s256_s7 = int_to_ptr.vmem [resolvable:$true] %s255_s7 }
  0x22   : > { %p746_p0 = pnand %p745_p13, %p82_p8  ;;  %s263_s24 = scalar_lea.sflag [#allocation10], %s1122_s29 }
  0x23   : > { %s205_s8 = sshll.u32 %s1326_s0, 4  ;;  %s266_s0 = scalar_lea.vmem [#allocation9], %s681_s6  ;;  %s206_s8 = int_to_ptr.hbm [resolvable:$true] %s205_s8 }
  0x24   : > { %748 = dma.hbm_to_vmem [thread:$0]  (!%p746_p0), %s206_s8, 256, %s208_s10, [#allocation4], %s1039_s17, %s1039_s17, %s1040_s25  }
  0x25   : > { %s251_s13 = scalar_lea.hbm %s1328_s2, %s1032_s22  ;;  %s274_s11 = sshll.u32 %s266_s0, 4  ;;  %s275_s11 = int_to_ptr.vmem [resolvable:$true] %s274_s11 }
  0x26   : > { %s253_s16 = sshll.u32 %s251_s13, 4  ;;  %s271_s2 = scalar_lea.hbm %s1314_s3, %s698_s18  ;;  %s254_s16 = int_to_ptr.hbm [resolvable:$true] %s253_s16 }
  0x27   : > { %755 = dma.hbm_to_vmem [thread:$0]  (!%p1136_p6), %s254_s16, 16, %s256_s7, %s1140_s15  }
  0x28   : > { %s272_s13 = sshll.u32 %s271_s2, 4  ;;  %286 = sbr.rel (%p1164_p12) target bundleno = 431 (0x1af), region = 40  ;;  %s273_s13 = int_to_ptr.hbm [resolvable:$true] %s272_s13 }
  0x29   : > { %758 = dma.hbm_to_vmem [thread:$0]  (!%p1136_p6), %s273_s13, 2048, %s275_s11, %s263_s24, %s1039_s17, %s1039_s17, %s1040_s25  }
  0x2d   : > { %999 = dma.done.wait (%p82_p8), [#allocation4], 256  }
  0x2e   : > { %1001 = vsyncadd (%p82_p8), [#allocation4], 4294967040  ;;  %s293_s0 = sand.u32 1, %s1148_s27   ;;  %s1203_s1 = sand.u32 1, %s1020_s19  }
  0x2f   : > { %s688_s2 = sshll.u32 %s1203_s1, 7  ;;  %s294_s29 = scalar_lea.sflag [#allocation7], %s293_s0 }
  0x30   : > { %s1206_s6 = scalar_lea.vmem [#allocation6], %s688_s2 }
  0x31   : > { %1003 = dma.done.wait (%p1157_p11), %s294_s29, 2064  }
  0x32   : > { %1005 = vsyncadd (%p1157_p11), %s294_s29, 4294965232  ;;  %s306_s24 = scalar_lea.vmem [#allocation8], %s1203_s1  ;;  %s313_s14 = scalar_lea.sflag [#allocation10], %s1203_s1 }
  0x33   : > { %s1214_s15 = scalar_lea.vmem [#allocation9], %s688_s2 }
  0x34   : > { %1007 = dma.done.wait (%p1157_p11), %s313_s14, 2048  }
  0x35   : > { %1009 = vsyncadd (%p1157_p11), %s313_s14, 4294965248  ;;  %p690_p1 = scmp.ne.s32.totalorder %s1028_s21, 0 }
  0x37   : > { %354 = sbr.rel (%p690_p1) target bundleno = 63 (0x3f), region = 60 }
  0x3c   : > { %v1042_v0 = vmov 0.0  }
  0x3d   : > { %355 = vst [vmem:[#allocation2] sm:$0xff] %v1042_v0 }
  0x3e   : > { %356 = vst [vmem:[#allocation2 + $0x8] sm:$0xff] %v1042_v0 }
  0x3f PF: > { %v374_v1 = vld [vmem:[%s1206_s6 + $0x78] sm:$0xff]  ;;  %v373_v2 = vld [vmem:[%s1206_s6 + $0x70] sm:$0xff]  ;;  %v372_v3 = vld [vmem:[%s1206_s6 + $0x68] sm:$0xff]  ;;  %p693_p2 = scmp.ne.s32.totalorder %s1028_s21, 1 }
  0x40   : > { %379 = vmatpush.msra.mxu0 %v374_v1  ;;  %699 = vmatpush.msra.mxu2 %v374_v1  ;;  %v371_v4 = vld [vmem:[%s1206_s6 + $0x60] sm:$0xff]  ;;  %v370_v5 = vld [vmem:[%s1206_s6 + $0x58] sm:$0xff]  ;;  %v369_v6 = vld [vmem:[%s1206_s6 + $0x50] sm:$0xff] }
  0x41   : > { %v368_v7 = vld [vmem:[%s1206_s6 + $0x48] sm:$0xff]  ;;  %v367_v8 = vld [vmem:[%s1206_s6 + $0x40] sm:$0xff]  ;;  %v366_v9 = vld [vmem:[%s1206_s6 + $0x38] sm:$0xff] }
  0x42   : > { %380 = vmatpush.msra.mxu0 %v373_v2  ;;  %700 = vmatpush.msra.mxu2 %v373_v2  ;;  %v365_v10 = vld [vmem:[%s1206_s6 + $0x30] sm:$0xff]  ;;  %v364_v11 = vld [vmem:[%s1206_s6 + $0x28] sm:$0xff]  ;;  %v363_v12 = vld [vmem:[%s1206_s6 + $0x20] sm:$0xff] }
  0x43   : > { %v362_v13 = vld [vmem:[%s1206_s6 + $0x18] sm:$0xff]  ;;  %v361_v14 = vld [vmem:[%s1206_s6 + $0x10] sm:$0xff]  ;;  %v360_v15 = vld [vmem:[%s1206_s6 + $0x8] sm:$0xff] }
  0x44   : > { %381 = vmatpush.msra.mxu0 %v372_v3  ;;  %701 = vmatpush.msra.mxu2 %v372_v3  ;;  %v359_v16 = vld [vmem:[%s1206_s6] sm:$0xff]  ;;  %v357_v17 = vld [vmem:[#allocation3] sm:$0xff]  ;;  %v358_v18 = vld [vmem:[#allocation3 + $0x8] sm:$0xff] }
  0x45   : > { %v507_v19 = vld [vmem:[%s1214_s15 + $0x78] sm:$0xff]  ;;  %v506_v20 = vld [vmem:[%s1214_s15 + $0x70] sm:$0xff]  ;;  %v505_v21 = vld [vmem:[%s1214_s15 + $0x68] sm:$0xff] }
  0x46   : > { %382 = vmatpush.msra.mxu0 %v371_v4  ;;  %702 = vmatpush.msra.mxu2 %v371_v4  ;;  %v504_v22 = vld [vmem:[%s1214_s15 + $0x60] sm:$0xff]  ;;  %v820_v23 = vld [vmem:[%s306_s24] ss:$0 sm:$0xff]  ;;  %v502_v26 = vld [vmem:[%s1214_s15 + $0x50] sm:$0xff] }
  0x47   : > { %508 = vmatpush.msra.mxu1 %v507_v19  ;;  %715 = vmatpush.msra.mxu3 %v507_v19  ;;  %v503_v24 = vld [vmem:[%s1214_s15 + $0x58] sm:$0xff]  ;;  %v501_v28 = vld [vmem:[%s1214_s15 + $0x48] sm:$0xff]  ;;  %v500_v30 = vld [vmem:[%s1214_s15 + $0x40] sm:$0xff] }
  0x48   : > { %383 = vmatpush.msra.mxu0 %v370_v5  ;;  %703 = vmatpush.msra.mxu2 %v370_v5  ;;  %v499_v31 = vld [vmem:[%s1214_s15 + $0x38] sm:$0xff]  ;;  %v498_v34 = vld [vmem:[%s1214_s15 + $0x30] sm:$0xff]  ;;  %v497_v37 = vld [vmem:[%s1214_s15 + $0x28] sm:$0xff] }
  0x49   : > { %509 = vmatpush.msra.mxu1 %v506_v20  ;;  %716 = vmatpush.msra.mxu3 %v506_v20  ;;  %v496_v40 = vld [vmem:[%s1214_s15 + $0x20] sm:$0xff]  ;;  %v495_v44 = vld [vmem:[%s1214_s15 + $0x18] sm:$0xff]  ;;  %v494_v48 = vld [vmem:[%s1214_s15 + $0x10] sm:$0xff] }
  0x4a   : > { %384 = vmatpush.msra.mxu0 %v369_v6  ;;  %704 = vmatpush.msra.mxu2 %v369_v6  ;;  %v493_v53 = vld [vmem:[%s1214_s15 + $0x8] sm:$0xff]  ;;  %v492_v57 = vld [vmem:[%s1214_s15] sm:$0xff] }
  0x4b   : > { %510 = vmatpush.msra.mxu1 %v505_v21  ;;  %717 = vmatpush.msra.mxu3 %v505_v21 }
  0x4c   : > { %385 = vmatpush.msra.mxu0 %v368_v7  ;;  %705 = vmatpush.msra.mxu2 %v368_v7 }
  0x4d   : > { %511 = vmatpush.msra.mxu1 %v504_v22  ;;  %718 = vmatpush.msra.mxu3 %v504_v22 }
  0x4e   : > { %386 = vmatpush.msra.mxu0 %v367_v8  ;;  %706 = vmatpush.msra.mxu2 %v367_v8 }
  0x4f   : > { %512 = vmatpush.msra.mxu1 %v503_v24  ;;  %719 = vmatpush.msra.mxu3 %v503_v24 }
  0x50   : > { %387 = vmatpush.msra.mxu0 %v366_v9  ;;  %707 = vmatpush.msra.mxu2 %v366_v9 }
  0x51   : > { %513 = vmatpush.msra.mxu1 %v502_v26  ;;  %720 = vmatpush.msra.mxu3 %v502_v26 }
  0x52   : > { %388 = vmatpush.msra.mxu0 %v365_v10  ;;  %708 = vmatpush.msra.mxu2 %v365_v10 }
  0x53   : > { %514 = vmatpush.msra.mxu1 %v501_v28  ;;  %721 = vmatpush.msra.mxu3 %v501_v28 }
  0x54   : > { %389 = vmatpush.msra.mxu0 %v364_v11  ;;  %709 = vmatpush.msra.mxu2 %v364_v11 }
  0x55   : > { %515 = vmatpush.msra.mxu1 %v500_v30  ;;  %722 = vmatpush.msra.mxu3 %v500_v30 }
  0x56   : > { %390 = vmatpush.msra.mxu0 %v363_v12  ;;  %710 = vmatpush.msra.mxu2 %v363_v12 }
  0x57   : > { %516 = vmatpush.msra.mxu1 %v499_v31  ;;  %723 = vmatpush.msra.mxu3 %v499_v31 }
  0x58   : > { %391 = vmatpush.msra.mxu0 %v362_v13  ;;  %711 = vmatpush.msra.mxu2 %v362_v13 }
  0x59   : > { %517 = vmatpush.msra.mxu1 %v498_v34  ;;  %724 = vmatpush.msra.mxu3 %v498_v34 }
  0x5a   : > { %392 = vmatpush.msra.mxu0 %v361_v14  ;;  %712 = vmatpush.msra.mxu2 %v361_v14 }
  0x5b   : > { %518 = vmatpush.msra.mxu1 %v497_v37  ;;  %725 = vmatpush.msra.mxu3 %v497_v37 }
  0x5c   : > { %393 = vmatpush.msra.mxu0 %v360_v15  ;;  %713 = vmatpush.msra.mxu2 %v360_v15 }
  0x5d   : > { %519 = vmatpush.msra.mxu1 %v496_v40  ;;  %726 = vmatpush.msra.mxu3 %v496_v40 }
  0x5e   : > { %394 = vmatpush.msra.mxu0 %v359_v16  ;;  %714 = vmatpush.msra.mxu2 %v359_v16 }
  0x5f   : > { %395 = vmatmul.f32.vlgmr.msra.gmra.mxu0 %v357_v17  ;;  %398 = vmatmul.f32.vlgmr.msra.gmra.mxu2 %v358_v18 }
  0x60   : > { %520 = vmatpush.msra.mxu1 %v495_v44  ;;  %727 = vmatpush.msra.mxu3 %v495_v44 }
  0x62   : > { %521 = vmatpush.msra.mxu1 %v494_v48  ;;  %728 = vmatpush.msra.mxu3 %v494_v48 }
  0x64   : > { %522 = vmatpush.msra.mxu1 %v493_v53  ;;  %729 = vmatpush.msra.mxu3 %v493_v53 }
  0x66   : > { %523 = vmatpush.msra.mxu1 %v492_v57  ;;  %730 = vmatpush.msra.mxu3 %v492_v57  ;;  %v490_v57 = vld [vmem:[#allocation2] sm:$0xff] }
  0xdc   : > { %v396_v25 = vpop.f32.mrf.mxu0 }
  0xdd   : > { %v1245_v27 = vadd.f32 %v820_v23, %v396_v25 }
  0xdf   : > { %v1249_v29 = vmul.f32 0.70710677, %v1245_v27  ;;  %v402_v48 = vmul.f32 0.5, %v1245_v27 }
  0xe1   : > { %v406_v32 = vmul.f32 %v1249_v29, %v1249_v29 }
  0xe2   : > { %v399_v33 = vpop.f32.mrf.mxu2 }
  0xe3   : > { %v1256_v35 = vmin.f32 %v406_v32, 16.0  ;;  %v1258_v36 = vadd.f32 %v820_v23, %v399_v33 }
  0xe5   : > { %v408_v38 = vmul.f32 2.1237322e-06, %v1256_v35  ;;  %v1263_v39 = vmul.f32 0.70710677, %v1258_v36  ;;  %v419_v41 = vmul.f32 3.8918573e-05, %v1256_v35 }
  0xe7   : > { %v409_v42 = vadd.f32 0.00028619796, %v408_v38  ;;  %v446_v43 = vmul.f32 %v1263_v39, %v1263_v39  ;;  %v420_v45 = vadd.f32 0.001143296, %v419_v41 }
  0xe9   : > { %v410_v46 = vmul.f32 %v409_v42, %v1256_v35  ;;  %v447_v47 = vmin.f32 %v446_v43, 16.0  ;;  %v421_v49 = vmul.f32 %v420_v45, %v1256_v35 }
  0xeb   : > { %v448_v50 = vmul.f32 2.1237322e-06, %v447_v47  ;;  %v459_v51 = vmul.f32 3.8918573e-05, %v447_v47  ;;  %v411_v52 = vadd.f32 0.0036580483, %v410_v46 }
  0xec   : > { %v422_v54 = vadd.f32 0.014752088, %v421_v49 }
  0xed   : > { %v449_v55 = vadd.f32 0.00028619796, %v448_v50  ;;  %v460_v56 = vadd.f32 0.001143296, %v459_v51  ;;  %v412_v61 = vmul.f32 %v411_v52, %v1256_v35 }
  0xee   : > { %v423_v58 = vmul.f32 %v422_v54, %v1256_v35  ;;  %v403_v54 = vmul.f32 0.5, %v1258_v36 }
  0xef   : > { %v450_v59 = vmul.f32 %v449_v55, %v447_v47  ;;  %v461_v60 = vmul.f32 %v460_v56, %v447_v47  ;;  %v413_v3 = vadd.f32 0.05243302, %v412_v61 }
  0xf0   : > { %v424_v62 = vadd.f32 0.112945676, %v423_v58 }
  0xf1   : > { %v451_v63 = vadd.f32 0.0036580483, %v450_v59  ;;  %v462_v0 = vadd.f32 0.014752088, %v461_v60  ;;  %v414_v9 = vmul.f32 %v413_v3, %v1256_v35 }
  0xf2   : > { %v425_v1 = vmul.f32 %v424_v62, %v1256_v35 }
  0xf3   : > { %v463_v2 = vmul.f32 %v462_v0, %v447_v47  ;;  %v452_v5 = vmul.f32 %v451_v63, %v447_v47  ;;  %v415_v14 = vadd.f32 0.18741608, %v414_v9 }
  0xf4   : > { %v426_v4 = vadd.f32 0.4994258, %v425_v1 }
  0xf5   : > { %v464_v6 = vadd.f32 0.112945676, %v463_v2  ;;  %v453_v11 = vadd.f32 0.05243302, %v452_v5  ;;  %v416_v18 = vmul.f32 %v415_v14, %v1256_v35 }
  0xf6   : > { %v427_v7 = vmul.f32 %v426_v4, %v1256_v35 }
  0xf7   : > { %v465_v8 = vmul.f32 %v464_v6, %v447_v47  ;;  %v454_v15 = vmul.f32 %v453_v11, %v447_v47  ;;  %v417_v22 = vadd.f32 1.1283791, %v416_v18 }
  0xf8   : > { %v428_v10 = vadd.f32 1.0, %v427_v7 }
  0xf9   : > { %v466_v12 = vadd.f32 0.4994258, %v465_v8  ;;  %v455_v19 = vadd.f32 0.18741608, %v454_v15  ;;  %v418_v32 = vmul.f32 %v417_v22, %v1249_v29 }
  0xfa   : > { %821 = vrcp.f32 %v428_v10  ;;  %v440_v23 = vand.u32 2147483648, %v428_v10  ;;  %v438_v28 = vand.u32 2147483647, %v428_v10  ;;  %vm434_vm1 = vweird.f32 %v428_v10 }
  0xfb   : > { %v467_v13 = vmul.f32 %v466_v12, %v447_v47  ;;  %v456_v25 = vmul.f32 %v455_v19, %v447_v47 }
  0xfc   : > { %v441_v33 = vor.u32 1.1754944e-38, %v440_v23  ;;  %vm439_vm3 = vcmp.eq.f32.partialorder %v438_v28, 8.507059e+37 }
  0xfd   : > { %v468_v16 = vadd.f32 1.0, %v467_v13  ;;  %v457_v37 = vadd.f32 1.1283791, %v456_v25 }
  0xff   : > { %823 = vrcp.f32 %v468_v16  ;;  %v480_v38 = vand.u32 2147483648, %v468_v16  ;;  %v478_v42 = vand.u32 2147483647, %v468_v16  ;;  %vm474_vm5 = vweird.f32 %v468_v16 }
 0x100   : > { %v822_v17 = vpop.eup %821  ;;  %v458_v47 = vmul.f32 %v457_v37, %v1263_v39  ;;  %v491_v39 = vld [vmem:[#allocation2 + $0x8] sm:$0xff] }
 0x101   : > { %v430_v20 = vmul.f32 %v822_v17, %v428_v10  ;;  %vm435_vm0 = vweird.f32 %v822_v17  ;;  %v481_v46 = vor.u32 1.1754944e-38, %v480_v38  ;;  %vm479_vm7 = vcmp.eq.f32.partialorder %v478_v42, 8.507059e+37 }
 0x102   : > { %vm436_vm2 = vmor %vm434_vm1, %vm435_vm0 }
 0x103   : > { %v431_v21 = vsub.f32 1.0, %v430_v20 }
 0x105   : > { %v824_v24 = vpop.eup %823  ;;  %v432_v26 = vmul.f32 %v822_v17, %v431_v21 }
 0x106   : > { %v470_v30 = vmul.f32 %v824_v24, %v468_v16  ;;  %vm475_vm4 = vweird.f32 %v824_v24 }
 0x107   : > { %v433_v31 = vadd.f32 %v822_v17, %v432_v26  ;;  %vm476_vm6 = vmor %vm474_vm5, %vm475_vm4 }
 0x108   : > { %v471_v34 = vsub.f32 1.0, %v470_v30 }
 0x109   : > { %v437_v35 = vsel %vm436_vm2, %v822_v17, %v433_v31 }
 0x10a   : > { %v442_v40 = vsel %vm439_vm3, %v441_v33, %v437_v35  ;;  %v472_v41 = vmul.f32 %v824_v24, %v471_v34 }
 0x10b   : > { %v443_v43 = vmul.f32 %v442_v40, %v418_v32 }
 0x10c   : > { %v473_v44 = vadd.f32 %v824_v24, %v472_v41 }
 0x10d   : > { %v691_v45 = vclamps-f32 %v443_v43, 1.0 }
 0x10e   : > { %v477_v29 = vsel %vm476_vm6, %v824_v24, %v473_v44 }
 0x10f   : > { %v486_v49 = vadd.f32 1.0, %v691_v45  ;;  %v482_v50 = vsel %vm479_vm7, %v481_v46, %v477_v29 }
 0x110   : > { %v483_v51 = vmul.f32 %v482_v50, %v458_v47 }
 0x111   : > { %v488_v52 = vmul.f32 %v486_v49, %v402_v48 }
 0x112   : > { %v692_v53 = vclamps-f32 %v483_v51, 1.0 }
 0x113   : > { %524 = vmatmul.f32.vlgmr.msra.gmra.mxu1 %v488_v52 }
 0x114   : > { %v487_v55 = vadd.f32 1.0, %v692_v53 }
 0x116   : > { %v489_v56 = vmul.f32 %v487_v55, %v403_v54 }
 0x118   : > { %527 = vmatmul.f32.vlgmr.msra.gmra.mxu3 %v489_v56 }
 0x190   : > { %v525_v58 = vpop.f32.mrf.mxu1 }
 0x191   : > { %v531_v59 = vadd.f32 %v525_v58, %v490_v57 }
 0x193   : > { %533 = vst [vmem:[#allocation2] sm:$0xff] %v531_v59 }
 0x19a   : > { %538 = sbr.rel (%p693_p2) target bundleno = 425 (0x1a9), region = 64 }
 0x19b   : > { %v528_v60 = vpop.f32.mrf.mxu3 }
 0x19c   : > { %v532_v61 = vadd.f32 %v528_v60, %v491_v39 }
 0x19e   : > { %534 = vst [vmem:[#allocation2 + $0x8] sm:$0xff] %v532_v61 }
 0x19f   : > { %v539_v27 = vld [vmem:[#allocation2] sm:$0xff] }
 0x1a0   : > { %v825_v62 = vld [vmem:[%s1315_s4] ss:$0 sm:$0xff] }
 0x1a1   : > { %v545_v63 = vadd.f32 %v825_v62, %v539_v27 }
 0x1a3   : > { %547 = vst [vmem:[#allocation11] sm:$0xff] %v545_v63 }
 0x1a5   : > { %v540_v36 = vld [vmem:[#allocation2 + $0x8] sm:$0xff] }
 0x1a6   : > { %v546_v0 = vadd.f32 %v825_v62, %v540_v36 }
 0x1a8   : > { %548 = vst [vmem:[#allocation11 + $0x8] sm:$0xff] %v546_v0 }
 0x1a9 PF: > { %p762_p3 = scmp.eq.s32.totalorder %s1148_s27, 1  ;;  %s559_s9 = sshll.u32 %s1316_s5, 4  ;;  %s560_s9 = int_to_ptr.hbm [resolvable:$true] %s559_s9 }
 0x1aa   : > { %s1043_s10 = smov [#allocation11]   ;;  %s1044_s16 = smov 128  }
 0x1ab   : > { %s557_s21 = sshll.u32 %s1043_s10, 4  ;;  %s1045_s28 = smov 8   ;;  %s558_s21 = int_to_ptr.vmem [resolvable:$true] %s557_s21 }
 0x1ac   : > { %742 = dma.vmem_to_hbm [thread:$0]  (%p762_p3), %s558_s21, 256, %s560_s9, [#allocation5], %s1044_s16, %s1044_s16, %s1045_s28  }
 0x1ad   : > { %1011 = dma.done.wait (%p762_p3), [#allocation5], 256  }
 0x1ae   : > { %1013 = vsyncadd (%p762_p3), [#allocation5], 4294967040 }
 0x1af PF: > { %s23_s23 = sadd.s32 1, %s1036_s23   ;;  %s1329_s27 = sld [smem:[#allocation16_spill]] }
 0x1b0   : > { %p20_p4 = scmp.ge.s32.totalorder %s23_s23, 4   ;;  %s1330_s18 = smov %s1020_s19 }
 0x1b1   : > { %s1331_s19 = smov %s1024_s20  ;;  %s1332_s20 = smov %s1125_s30 }
 0x1b2   : > { %s1333_s21 = smov %s1032_s22  ;;  %22 = sbr.rel (!%p20_p4) target bundleno = 12 (0xc), region = 116 }
 0x1b5   : > { %s1334_s22 = smov %s1329_s27 }
 0x1b7   :  { %576 = vsyncpa [#allocation4], 1 }
 0x1b8   :  { %578 = vsyncpa [#allocation4 + $0x1], 1 }
 0x1b9   :  { %579 = vsyncpa [#allocation7], 1 }
 0x1ba   :  { %581 = vsyncpa [#allocation7 + $0x1], 1 }
 0x1bb   :  { %582 = vsyncpa [#allocation10], 1 }
 0x1bc   :  { %584 = vsyncpa [#allocation10 + $0x1], 1 }
 0x1bd   :  { %585 = vsyncpa [#allocation5], 1 }
 0x1be   :  { %587 = vsyncpa [#allocation5 + $0x1], 1 }

</bundles_post_ra>
